<compile_context>
chip_gen: v5e
topology: v5e:2x2
jax: 0.10.0
libtpu: 0.0.40
codegen_flags: <defaults>
</compile_context>

<pallas_src>
import math

import jax
import jax.numpy as jnp
from jax.experimental import pallas as pl
from jax.experimental.pallas import tpu as pltpu

_LANES = 128
_SUBLANES = 8
_MAX_BLOCK_ROWS = 1024   # (1024, 128) f32 block = 512 KiB per input
_NUM_CHUNKS = 2          # leading "parallel" grid axis (sharded across TCs on v7x)


def _bce_sum_kernel(x_ref, t_ref, out_ref):
    """Accumulate stable BCE-with-logits (max(x,0) - x*t + log1p(exp(-|x|))) into a
    per-chunk (1, 8, 128) f32 accumulator that lives in the output block."""
    @pl.when(pl.program_id(1) == 0)
    def _():
        out_ref[...] = jnp.zeros_like(out_ref)

    x = x_ref[...].astype(jnp.float32)
    t = t_ref[...].astype(jnp.float32)
    loss = jnp.maximum(x, 0.0) - x * t + jnp.log1p(jnp.exp(-jnp.abs(x)))

    # Fold (block_rows, 128) -> (1, 8, 128) with pure vreg-wise VPU adds; the expensive
    # cross-lane/sublane reduce happens once, outside the kernel.
    out_ref[...] += loss.reshape(1, -1, _SUBLANES, _LANES).sum(axis=1)


def _bce_sum_ref(x, t):
    """Plain-JAX BCE-with-logits sum (used for the sub-block tail and tiny inputs)."""
    x = x.astype(jnp.float32)
    t = t.astype(jnp.float32)
    return jnp.sum(jnp.maximum(x, 0.0) - x * t + jnp.log1p(jnp.exp(-jnp.abs(x))))


def _tiling(n):
    """Static tiling: (num_chunks, block_rows, blocks_per_chunk, rows_bulk) or None."""
    # rows of 128 lanes, rounded down to a multiple of 8 sublanes
    rows8 = (n // (_SUBLANES * _LANES)) * _SUBLANES
    if rows8 == 0:
        return None
    num_chunks = _NUM_CHUNKS if rows8 >= _NUM_CHUNKS * _SUBLANES else 1
    per_chunk = rows8 // num_chunks
    block_rows = min(_MAX_BLOCK_ROWS, (per_chunk // _SUBLANES) * _SUBLANES)
    blocks_per_chunk = per_chunk // block_rows
    rows_bulk = num_chunks * blocks_per_chunk * block_rows
    return num_chunks, block_rows, blocks_per_chunk, rows_bulk


@jax.jit
def binary_cross_entropy(y_logits, y_target):
    """BCE-with-logits, reduction='mean', weight=None. Any-rank inputs (NCHW expected)."""
    # TODO(synk): per-element `weight` tensor (module default is None) not implemented.
    assert y_logits.shape == y_target.shape
    n = math.prod(y_logits.shape)  # static Python int (shapes are static under jit)

    x = y_logits.reshape(-1)
    t = y_target.reshape(-1)

    tiling = _tiling(n)
    if tiling is None:
        # Input smaller than one (8, 128) tile: not worth a kernel launch.
        total = _bce_sum_ref(x, t)
    else:
        num_chunks, block_rows, nb, rows_bulk = tiling
        n_bulk = rows_bulk * _LANES

        xb = x if n_bulk == n else x[:n_bulk]
        tb = t if n_bulk == n else t[:n_bulk]
        xb = xb.reshape(rows_bulk, _LANES)
        tb = tb.reshape(rows_bulk, _LANES)

        partial = pl.pallas_call(
            _bce_sum_kernel,
            out_shape=jax.ShapeDtypeStruct((num_chunks, _SUBLANES, _LANES), jnp.float32),
            grid_spec=pltpu.PrefetchScalarGridSpec(
                num_scalar_prefetch=0,
                grid=(num_chunks, nb),
                in_specs=[
                    pl.BlockSpec((block_rows, _LANES), lambda c, j: (c * nb + j, 0)),
                    pl.BlockSpec((block_rows, _LANES), lambda c, j: (c * nb + j, 0)),
                ],
                out_specs=pl.BlockSpec((1, _SUBLANES, _LANES), lambda c, j: (c, 0, 0)),
            ),
            compiler_params=pltpu.CompilerParams(
                dimension_semantics=("parallel", "arbitrary"),
            ),
        )(xb, tb)

        total = jnp.sum(partial)
        if n_bulk < n:
            # < one block worth of trailing elements: cheap plain-JAX tail.
            total = total + _bce_sum_ref(x[n_bulk:], t[n_bulk:])

    # reduction='mean': n is static -> constant reciprocal multiply.
    return total * jnp.float32(1.0 / n)


def _check(shape, key):
    k1, k2 = jax.random.split(key)
    y_logits = jax.random.normal(k1, shape, dtype=jnp.float32)
    y_target = (jax.random.uniform(k2, shape) > 0.5).astype(jnp.float32)

    loss = binary_cross_entropy(y_logits, y_target)
    jax.block_until_ready(loss)

    ref = _bce_sum_ref(y_logits.reshape(-1), y_target.reshape(-1)) / math.prod(shape)
    assert jnp.allclose(loss, ref, rtol=1e-5, atol=1e-6), (shape, loss, ref)


if __name__ == "__main__":
    key = jax.random.PRNGKey(0)
    k1, k2, k3 = jax.random.split(key, 3)

    _check((2, 4, 16, 16), k1)     # spec shape: one block per chunk, no tail
    _check((2, 4, 256, 256), k2)   # multi-block accumulation along the inner grid axis
    _check((2, 3, 37, 53), k3)     # non-tile-aligned size: exercises the plain-JAX tail path

    print("KERNEL_OK")
</pallas_src>

<mosaic_0001>
module attributes {stable_mosaic.version = 11 : i64} {
  func.func @_bce_sum_kernel(%arg0: i32, %arg1: i32, %arg2: memref<8x128xf32, #tpu.memory_space<vmem>>, %arg3: memref<8x128xf32, #tpu.memory_space<vmem>>, %arg4: memref<1x8x128xf32, #tpu.memory_space<vmem>>) attributes {dimension_semantics = [#tpu.dimension_semantics<parallel>, #tpu.dimension_semantics<arbitrary>], iteration_bounds = array<i64: 2, 1>, scalar_prefetch = 0 : i64, scratch_operands = 0 : i64, tpu.core_type = #tpu.core_type<tc>, window_params = [{transform_indices = @transform_0, window_bounds = array<i64: 8, 128>}, {transform_indices = @transform_1, window_bounds = array<i64: 8, 128>}, {transform_indices = @transform_2, window_bounds = array<i64: 1, 8, 128>}]} {
    %c0_i32 = arith.constant 0 : i32
    %0 = arith.cmpi eq, %arg1, %c0_i32 : i32
    %1 = arith.extui %0 : i1 to i32
    %c0_i32_0 = arith.constant 0 : i32
    %2 = arith.cmpi ne, %1, %c0_i32_0 : i32
    scf.if %2 {
      %cst_12 = arith.constant 0.000000e+00 : f32
      %20 = vector.broadcast %cst_12 : f32 to vector<1x8x128xf32>
      %c0_13 = arith.constant 0 : index
      %c0_14 = arith.constant 0 : index
      %c0_15 = arith.constant 0 : index
      %21 = vector.load %arg4[%c0_13, %c0_14, %c0_15] : memref<1x8x128xf32, #tpu.memory_space<vmem>>, vector<1x8x128xf32>
      tpu.vector_store %arg4[%c0_13, %c0_14, %c0_15], %20 {strides = array<i32>} : memref<1x8x128xf32, #tpu.memory_space<vmem>>, vector<1x8x128xf32>,
    } else {
    }
    %c0 = arith.constant 0 : index
    %c0_1 = arith.constant 0 : index
    %3 = vector.load %arg2[%c0, %c0_1] : memref<8x128xf32, #tpu.memory_space<vmem>>, vector<8x128xf32>
    %c0_2 = arith.constant 0 : index
    %c0_3 = arith.constant 0 : index
    %4 = vector.load %arg3[%c0_2, %c0_3] : memref<8x128xf32, #tpu.memory_space<vmem>>, vector<8x128xf32>
    %cst = arith.constant 0.000000e+00 : f32
    %5 = vector.broadcast %cst : f32 to vector<8x128xf32>
    %6 = arith.maximumf %3, %5 : vector<8x128xf32>
    %7 = arith.mulf %3, %4 : vector<8x128xf32>
    %8 = arith.subf %6, %7 : vector<8x128xf32>
    %9 = math.absf %3 : vector<8x128xf32>
    %cst_4 = arith.constant 0.000000e+00 : f32
    %10 = vector.broadcast %cst_4 : f32 to vector<8x128xf32>
    %11 = arith.subf %10, %9 : vector<8x128xf32>
    %12 = math.exp %11 : vector<8x128xf32>
    %13 = math.log1p %12 : vector<8x128xf32>
    %14 = arith.addf %8, %13 : vector<8x128xf32>
    %c0_5 = arith.constant 0 : index
    %c0_6 = arith.constant 0 : index
    %c0_7 = arith.constant 0 : index
    %15 = vector.load %arg4[%c0_5, %c0_6, %c0_7] : memref<1x8x128xf32, #tpu.memory_space<vmem>>, vector<1x8x128xf32>
    %16 = vector.shape_cast %14 : vector<8x128xf32> to vector<1x1x8x128xf32>
    %cst_8 = arith.constant dense<0.000000e+00> : vector<1x8x128xf32>
    %17 = vector.multi_reduction <add>, %16, %cst_8 [1] : vector<1x1x8x128xf32> to vector<1x8x128xf32>
    %18 = arith.addf %15, %17 : vector<1x8x128xf32>
    %c0_9 = arith.constant 0 : index
    %c0_10 = arith.constant 0 : index
    %c0_11 = arith.constant 0 : index
    %19 = vector.load %arg4[%c0_9, %c0_10, %c0_11] : memref<1x8x128xf32, #tpu.memory_space<vmem>>, vector<1x8x128xf32>
    tpu.vector_store %arg4[%c0_9, %c0_10, %c0_11], %18 {strides = array<i32>} : memref<1x8x128xf32, #tpu.memory_space<vmem>>, vector<1x8x128xf32>,
    return
  }
  func.func @transform_0(%arg0: i32, %arg1: i32) -> (i32, i32) {
    %c1_i32 = arith.constant 1 : i32
    %0 = arith.muli %arg0, %c1_i32 : i32
    %1 = arith.addi %0, %arg1 : i32
    %c0_i32 = arith.constant 0 : i32
    %c0_i32_0 = arith.constant 0 : i32
    return %1, %c0_i32 : i32, i32
  }
  func.func @transform_1(%arg0: i32, %arg1: i32) -> (i32, i32) {
    %c1_i32 = arith.constant 1 : i32
    %0 = arith.muli %arg0, %c1_i32 : i32
    %1 = arith.addi %0, %arg1 : i32
    %c0_i32 = arith.constant 0 : i32
    %c0_i32_0 = arith.constant 0 : i32
    return %1, %c0_i32 : i32, i32
  }
  func.func @transform_2(%arg0: i32, %arg1: i32) -> (i32, i32, i32) {
    %c0_i32 = arith.constant 0 : i32
    %c0_i32_0 = arith.constant 0 : i32
    %c0_i32_1 = arith.constant 0 : i32
    return %arg0, %c0_i32, %c0_i32_0 : i32, i32, i32
  }
}

</mosaic_0001>

<bundles_post_ra>
// kernel: binary_cross_entropy.1
= control target key start
LH: loop header
LB: loop body
LE: loop exit
PB: predicated region body
PF: predicated region fallthrough
CT: control target
= control target key end

     0   :  { %s361_s9 = smov 0   ;;  %s363_s10 = smov 0   ;;  %s397_s0 = inlined_call_operand.vmem [shape: f32[16,128], index: 0, kind: input, shape index: {}]   ;;  %s398_s1 = inlined_call_operand.vmem [shape: f32[16,128], index: 1, kind: input, shape index: {}]   ;;  %s399_s2 = inlined_call_operand.vmem [shape: f32[2,8,128], index: 2, kind: output, shape index: {}]  }
   0x1   :  { %s365_s11 = smov 0  }
   0x2 LB: > { %s24_s12 = sadd.s32 1, %s340_s10  ;;  %p287_p0 = scmp.ge.s32.totalorder %s344_s11, 1  ;;  %s344_s11 = sphi %s365_s11, %s12_s11   ;;  %s340_s10 = sphi %s363_s10, %s401_s10   ;;  %s336_s9 = sphi %s361_s9, %s400_s9  }
   0x3   : > { %p26_p1 = scmp.ge.s32.totalorder %s24_s12, 2  ;;  %p140_p2 = scmp.lt.s32.totalorder %s344_s11, 3 }
   0x5   : > { %s403_s12 = smov (%p26_p1, %s24_s12), 0  ;;  %p141_p3 = pnand %p287_p0, %p140_p2 }
   0x6   : > { %p167_p4 = scmp.lt.s32.totalorder (!%p141_p3), %s336_s9, 1 }
   0x7   : > { %144 = sbr.rel (%p141_p3) target bundleno = 44 (0x2c), region = 28 }
   0xc   : > { %s405_s9 = smov (!%p167_p4, %s336_s9), 1 }
   0xd   : > { %s288_s13 = sshll.u32 %s405_s9, 3 }
   0xe   : > { %s170_s16 = scalar_lea.vmem %s397_s0, %s288_s13  ;;  %s176_s19 = scalar_lea.vmem %s398_s1, %s288_s13 }
   0xf   : > { %v187_v0 = vld [vmem:[%s170_s16] sm:$0xff]  ;;  %s181_s22 = scalar_lea.vmem %s399_s2, %s288_s13 }
  0x10   : > { %v192_v1 = vand.u32 2147483647, %v187_v0  ;;  %v188_v7 = vld [vmem:[%s176_s19] sm:$0xff]  ;;  %v189_v9 = vmax.f32 %v187_v0, 0.0 }
  0x11   : > { %v190_v10 = vmul.f32 %v188_v7, %v187_v0 }
  0x12   : > { %v193_v2 = vsub.f32 0.0, %v192_v1 }
  0x13   : > { %v191_v14 = vsub.f32 %v189_v9, %v190_v10 }
  0x14   : > { %v194_v3 = vmul.f32 1.442695, %v193_v2 }
  0x16   : > { %318 = vpow2.f32 %v194_v3 }
  0x1c   : > { %v319_v4 = vpop.eup %318 }
  0x1d   : > { %v196_v5 = vadd.f32 1.0, %v319_v4  ;;  %v199_v6 = vmul.f32 -0.5, %v319_v4  ;;  %v202_v11 = vand.u32 2147483647, %v319_v4 }
  0x1f   : > { %320 = vlog2.f32 %v196_v5  ;;  %v200_v8 = vadd.f32 1.0, %v199_v6  ;;  %vm203_vm0 = vcmp.lt.f32.partialorder %v202_v11, 0.0004427343 }
  0x21   : > { %v201_v12 = vmul.f32 %v319_v4, %v200_v8 }
  0x25   : > { %v321_v13 = vpop.eup %320 }
  0x26   : > { %v198_v15 = vmul.f32 0.6931472, %v321_v13 }
  0x28   : > { %v204_v16 = vsel %vm203_vm0, %v201_v12, %v198_v15 }
  0x29   : > { %v205_v17 = vadd.f32 %v204_v16, %v191_v14 }
  0x2b   : > { %209 = vst [vmem:[%s181_s22] sm:$0xff] %v205_v17 }
  0x2c PF: > { %s12_s11 = sadd.s32 1, %s344_s11   ;;  %s400_s9 = smov %s340_s10 }
  0x2d   : > { %p9_p5 = scmp.ge.s32.totalorder %s12_s11, 4   ;;  %s401_s10 = smov %s403_s12 }
  0x2f   :  { %11 = sbr.rel (!%p9_p5) target bundleno = 2 (0x2), region = 65 }

</bundles_post_ra>
